<compile_context>
chip_gen: v6e
topology: v6e:2x2x1
jax: 0.10.0
libtpu: 0.0.40
codegen_flags: <defaults>
</compile_context>

<pallas_src>
import jax
import jax.numpy as jnp
from jax.experimental import pallas as pl
from jax.experimental.pallas import tpu as pltpu


def _grn_kernel(x_ref, gb_ref, sel_ref, o_ref):
    # x_ref, o_ref: (1, H, W*C)  lane-dense per-batch view of the NHWC input
    # gb_ref:       (2, C)       row 0 = gamma, row 1 = beta
    # sel_ref:      (C, W*C)     sel[c, j] = 1.0 iff (j % C) == c  (resident)
    x = x_ref[...]                                    # (1, H, W*C) f32

    # Partial sum of squares over H (sublane reduction, stays lane-dense).
    ss_w = jnp.sum(x * x, axis=1)                     # (1, W*C)

    sel = sel_ref[...]                                # (C, W*C)

    # Fold the W copies of each channel on the MXU:
    #   ss_c[0, c] = sum_{h, w} x[0, h, w, c]^2
    ss_c = jax.lax.dot_general(
        ss_w, sel, (((1,), (1,)), ((), ())),
        preferred_element_type=jnp.float32)           # (1, C)

    gx = jnp.sqrt(ss_c)                               # L2 norm over (H, W)
    nx = gx / (jnp.mean(gx, axis=-1, keepdims=True) + 1e-6)   # (1, C)

    # gamma * (x * Nx) + beta + x  ==  x * (1 + gamma*Nx) + beta.
    # Build the two rows [1 + gamma*Nx ; beta] with a cheap VPU select (no
    # in-kernel concat), then unfold BOTH to the W*C lane axis with one matmul
    # (every sel column has exactly one 1).
    gb = gb_ref[...]                                  # (2, C)
    is_gamma_row = jax.lax.broadcasted_iota(jnp.int32, (2, gb.shape[1]), 0) == 0
    aug = jnp.where(is_gamma_row, 1.0 + gb * nx, gb)  # (2, C)
    tiled = jnp.dot(aug, sel, preferred_element_type=jnp.float32)   # (2, W*C)

    scale1 = tiled[0:1][:, None, :]                   # (1, 1, W*C): 1 + gamma*Nx tiled
    beta_t = tiled[1:2][:, None, :]                   # (1, 1, W*C): beta tiled
    o_ref[...] = (x * scale1 + beta_t).astype(o_ref.dtype)


def global_response_norm(x_nhwc, gamma, beta):
    """x_nhwc: [B, H, W, C] channels-last; gamma, beta: (1, 1, 1, C) params.
    Returns [B, H, W, C]."""
    B, H, W, C = x_nhwc.shape
    WC = W * C
    assert gamma.size == C and beta.size == C, (gamma.shape, beta.shape, C)
    # Lane-dense layout assumption: unmasked stores only hold when the
    # collapsed last dim is a multiple of 128.
    assert WC % 128 == 0, f"W*C={WC} must be a multiple of 128 (pad W or C)"

    # Free collapse of contiguous dims (no transpose, no extra HBM pass).
    x3 = x_nhwc.reshape(B, H, WC)
    # gamma/beta stacked as one tiny (2, C) input.
    gb = jnp.concatenate(
        [gamma.reshape(1, C), beta.reshape(1, C)], axis=0).astype(jnp.float32)
    # Selector sel[c, j] = 1 iff (j % C) == c, built once outside the kernel
    # and kept resident in VMEM via a constant index_map.
    sel = jnp.tile(jnp.eye(C, dtype=jnp.float32), (1, W))        # (C, W*C)

    out = pl.pallas_call(
        _grn_kernel,
        out_shape=jax.ShapeDtypeStruct((B, H, WC), x_nhwc.dtype),
        grid_spec=pltpu.PrefetchScalarGridSpec(
            num_scalar_prefetch=0,
            grid=(B,),  # one batch per step; 'parallel' -> both TCs on v7x
            in_specs=[
                pl.BlockSpec((1, H, WC), lambda b: (b, 0, 0)),
                pl.BlockSpec((2, C), lambda b: (0, 0)),
                pl.BlockSpec((C, WC), lambda b: (0, 0)),
            ],
            out_specs=pl.BlockSpec((1, H, WC), lambda b: (b, 0, 0)),
        ),
        compiler_params=pltpu.CompilerParams(
            dimension_semantics=("parallel",),
            vmem_limit_bytes=32 * 1024 * 1024,
        ),
    )(x3, gb, sel)
    return out.reshape(B, H, W, C)


def reference(x, gamma, beta):
    gx = jnp.sqrt(jnp.sum(x * x, axis=(1, 2), keepdims=True))      # (B,1,1,C)
    nx = gx / (jnp.mean(gx, axis=-1, keepdims=True) + 1e-6)
    return gamma * (x * nx) + beta + x


if __name__ == "__main__":
    # Small shapes consistent with the module: NHWC, batch=2, spatial=16, dim=32.
    B, H, W, C = 2, 16, 16, 32

    key = jax.random.PRNGKey(0)
    kx, kg, kb = jax.random.split(key, 3)

    x = jax.random.normal(kx, (B, H, W, C), dtype=jnp.float32)
    # PyTorch initializes gamma/beta to zeros (identity op); use random values
    # here so the numerical check exercises the full GRN math.
    gamma = jax.random.normal(kg, (1, 1, 1, C), dtype=jnp.float32) * 0.5
    beta = jax.random.normal(kb, (1, 1, 1, C), dtype=jnp.float32) * 0.5

    out = global_response_norm(x, gamma, beta)
    out = jax.block_until_ready(out)

    ref = reference(x, gamma, beta)
    assert out.shape == (B, H, W, C), out.shape
    assert jnp.allclose(out, ref, atol=1e-4, rtol=1e-4), float(
        jnp.max(jnp.abs(out - ref))
    )
    print("KERNEL_OK")
</pallas_src>

<mosaic_0001>
module attributes {stable_mosaic.version = 11 : i64} {
  func.func @_grn_kernel(%arg0: i32, %arg1: memref<1x16x512xf32, #tpu.memory_space<vmem>>, %arg2: memref<2x32xf32, #tpu.memory_space<vmem>>, %arg3: memref<32x512xf32, #tpu.memory_space<vmem>>, %arg4: memref<1x16x512xf32, #tpu.memory_space<vmem>>) attributes {dimension_semantics = [#tpu.dimension_semantics<parallel>], iteration_bounds = array<i64: 2>, scalar_prefetch = 0 : i64, scratch_operands = 0 : i64, tpu.core_type = #tpu.core_type<tc>, window_params = [{transform_indices = @transform_0, window_bounds = array<i64: 1, 16, 512>}, {pipeline_mode = #tpu.pipeline_mode<synchronous>, transform_indices = @transform_1, window_bounds = array<i64: 2, 32>}, {pipeline_mode = #tpu.pipeline_mode<synchronous>, transform_indices = @transform_2, window_bounds = array<i64: 32, 512>}, {transform_indices = @transform_3, window_bounds = array<i64: 1, 16, 512>}]} {
    %c0 = arith.constant 0 : index
    %c0_0 = arith.constant 0 : index
    %c0_1 = arith.constant 0 : index
    %0 = vector.load %arg1[%c0, %c0_0, %c0_1] : memref<1x16x512xf32, #tpu.memory_space<vmem>>, vector<1x16x512xf32>
    %1 = arith.mulf %0, %0 : vector<1x16x512xf32>
    %cst = arith.constant dense<0.000000e+00> : vector<1x512xf32>
    %2 = vector.multi_reduction <add>, %1, %cst [1] : vector<1x16x512xf32> to vector<1x512xf32>
    %c0_2 = arith.constant 0 : index
    %c0_3 = arith.constant 0 : index
    %3 = vector.load %arg3[%c0_2, %c0_3] : memref<32x512xf32, #tpu.memory_space<vmem>>, vector<32x512xf32>
    %cst_4 = arith.constant dense<0.000000e+00> : vector<1x32xf32>
    %4 = tpu.matmul %2, %3, %cst_4 {dimension_numbers = #tpu.dot_dimension_numbers<[1], [1], [0], [0], [0, 0, 1, 0], [], []>} : vector<1x512xf32>, vector<32x512xf32>, vector<1x32xf32> -> vector<1x32xf32>
    %5 = math.sqrt %4 : vector<1x32xf32>
    %cst_5 = arith.constant dense<0.000000e+00> : vector<1xf32>
    %6 = vector.multi_reduction <add>, %5, %cst_5 [1] : vector<1x32xf32> to vector<1xf32>
    %7 = vector.shape_cast %6 : vector<1xf32> to vector<1x1xf32>
    %cst_6 = arith.constant 3.200000e+01 : f32
    %8 = vector.broadcast %cst_6 : f32 to vector<1x1xf32>
    %9 = arith.divf %7, %8 : vector<1x1xf32>
    %cst_7 = arith.constant 9.99999997E-7 : f32
    %10 = vector.broadcast %cst_7 : f32 to vector<1x1xf32>
    %11 = arith.addf %9, %10 : vector<1x1xf32>
    %12 = vector.broadcast %11 : vector<1x1xf32> to vector<1x32xf32>
    %13 = arith.divf %5, %12 : vector<1x32xf32>
    %c0_8 = arith.constant 0 : index
    %c0_9 = arith.constant 0 : index
    %14 = vector.load %arg2[%c0_8, %c0_9] : memref<2x32xf32, #tpu.memory_space<vmem>>, vector<2x32xf32>
    %15 = tpu.iota {dimensions = array<i32: 0>} : vector<2x32xi32>
    %c0_i32 = arith.constant 0 : i32
    %16 = vector.broadcast %c0_i32 : i32 to vector<2x32xi32>
    %17 = arith.cmpi eq, %15, %16 : vector<2x32xi32>
    %18 = vector.broadcast %13 : vector<1x32xf32> to vector<2x32xf32>
    %19 = arith.mulf %14, %18 : vector<2x32xf32>
    %cst_10 = arith.constant 1.000000e+00 : f32
    %20 = vector.broadcast %cst_10 : f32 to vector<2x32xf32>
    %21 = arith.addf %20, %19 : vector<2x32xf32>
    %22 = arith.select %17, %21, %14 : vector<2x32xi1>, vector<2x32xf32>
    %cst_11 = arith.constant dense<0.000000e+00> : vector<2x512xf32>
    %23 = tpu.matmul %22, %3, %cst_11 {dimension_numbers = #tpu.dot_dimension_numbers<[1], [0], [0], [1], [0, 0, 1, 1], [], []>} : vector<2x32xf32>, vector<32x512xf32>, vector<2x512xf32> -> vector<2x512xf32>
    %24 = vector.extract_strided_slice %23 {offsets = [0, 0], sizes = [1, 512], strides = [1, 1]} : vector<2x512xf32> to vector<1x512xf32>
    %25 = vector.shape_cast %24 : vector<1x512xf32> to vector<1x1x512xf32>
    %26 = vector.extract_strided_slice %23 {offsets = [1, 0], sizes = [1, 512], strides = [1, 1]} : vector<2x512xf32> to vector<1x512xf32>
    %27 = vector.shape_cast %26 : vector<1x512xf32> to vector<1x1x512xf32>
    %28 = vector.broadcast %25 : vector<1x1x512xf32> to vector<1x16x512xf32>
    %29 = arith.mulf %0, %28 : vector<1x16x512xf32>
    %30 = vector.broadcast %27 : vector<1x1x512xf32> to vector<1x16x512xf32>
    %31 = arith.addf %29, %30 : vector<1x16x512xf32>
    %c0_12 = arith.constant 0 : index
    %c0_13 = arith.constant 0 : index
    %c0_14 = arith.constant 0 : index
    %32 = vector.load %arg4[%c0_12, %c0_13, %c0_14] : memref<1x16x512xf32, #tpu.memory_space<vmem>>, vector<1x16x512xf32>
    tpu.vector_store %arg4[%c0_12, %c0_13, %c0_14], %31 {strides = array<i32>} : memref<1x16x512xf32, #tpu.memory_space<vmem>>, vector<1x16x512xf32>,
    return
  }
  func.func @transform_0(%arg0: i32) -> (i32, i32, i32) {
    %c0_i32 = arith.constant 0 : i32
    %c0_i32_0 = arith.constant 0 : i32
    %c0_i32_1 = arith.constant 0 : i32
    return %arg0, %c0_i32, %c0_i32_0 : i32, i32, i32
  }
  func.func @transform_1(%arg0: i32) -> (i32, i32) {
    %c0_i32 = arith.constant 0 : i32
    %c0_i32_0 = arith.constant 0 : i32
    %c0_i32_1 = arith.constant 0 : i32
    return %c0_i32, %c0_i32_0 : i32, i32
  }
  func.func @transform_2(%arg0: i32) -> (i32, i32) {
    %c0_i32 = arith.constant 0 : i32
    %c0_i32_0 = arith.constant 0 : i32
    %c0_i32_1 = arith.constant 0 : i32
    return %c0_i32, %c0_i32_0 : i32, i32
  }
  func.func @transform_3(%arg0: i32) -> (i32, i32, i32) {
    %c0_i32 = arith.constant 0 : i32
    %c0_i32_0 = arith.constant 0 : i32
    %c0_i32_1 = arith.constant 0 : i32
    return %arg0, %c0_i32, %c0_i32_0 : i32, i32, i32
  }
}

</mosaic_0001>

<bundles_post_ra>
// kernel: tpu_custom_call.1
= control target key start
LH: loop header
LB: loop body
LE: loop exit
PB: predicated region body
PF: predicated region fallthrough
CT: control target
= control target key end

     0   :  { %8 = vsyncpa [#allocation3], 0  ;;  %s1320_s0 = inlined_call_operand.hbm [shape: f32[2,16,512], index: 0, kind: input, shape index: {}]   ;;  %s1321_s1 = inlined_call_operand.hbm [shape: f32[2,32], index: 1, kind: input, shape index: {}]   ;;  %s1322_s2 = inlined_call_operand.hbm [shape: f32[32,512], index: 2, kind: input, shape index: {}]   ;;  %s1323_s3 = inlined_call_operand.hbm [shape: f32[2,16,512], index: 3, kind: output, shape index: {}]  }
   0x1   :  { %10 = vsyncpa [#allocation3 + $0x1], 0 }
   0x2   :  { %11 = vsyncpa [#allocation6], 0 }
   0x3   :  { %12 = vsyncpa [#allocation4], 0 }
   0x4   :  { %14 = vsyncpa [#allocation4 + $0x1], 0  ;;  %s1028_s12 = smov 0   ;;  %s1030_s13 = smov 0  }
   0x5   :  { %s1032_s14 = smov 0   ;;  %s1034_s15 = smov 0  }
   0x6 LB: > { %s1049_s16 = sadd.s32 4294967295, %s997_s15   ;;  %s751_s17 = sadd.s32 4294967294, %s997_s15   ;;  %s997_s15 = sphi %s1034_s15, %s1346_s15   ;;  %s993_s14 = sphi %s1032_s14, %s1345_s14   ;;  %s989_s13 = sphi %s1030_s13, %s1344_s13   ;;  %s985_s12 = sphi %s1028_s12, %s1343_s12  }
   0x7   : > { %s1053_s18 = sadd.s32 1, %s997_s15   ;;  %s27_s19 = sadd.s32 1, %s993_s14 }
   0x8   : > { %s24_s20 = ssub.s32 %s997_s15, %s1053_s18  ;;  %p34_p0 = scmp.ne.s32.totalorder %s993_s14, %s989_s13 }
   0x9   : > { %p25_p1 = scmp.eq.s32.totalorder %s24_s20, 0  ;;  %p35_p2 = scmp.eq.s32.totalorder %s997_s15, 0 }
   0xa   : > { %p40_p3 = scmp.ne.s32.totalorder %s989_s13, %s985_s12  ;;  %p1324_p4 = scmp.eq.s32.totalorder %s1049_s16, 0 }
   0xb   : > { %s1065_s21 = scalar_select %p25_p1, %s993_s14, %s27_s19  }
   0xc   : > { %p1067_p5 = por %p35_p2, %p34_p0  ;;  %p1073_p6 = por %p1324_p4, %p40_p3 }
   0xd   : > { %p106_p7 = scmp.eq.s32.totalorder %s1049_s16, 1  ;;  %p112_p8 = scmp.eq.s32.totalorder %s751_s17, 1 }
   0xe   : > { %s1329_s23 = scalar_select %p1073_p6, 1, 0 }
   0xf   : > { %p752_p9 = scmp.ge.s32.totalorder %s997_s15, 1  ;;  %p119_p10 = scmp.lt.s32.totalorder %s997_s15, 3 }
  0x10   : > { %p1080_p11 = por %p106_p7, %p34_p0  ;;  %p1084_p12 = por %p112_p8, %p40_p3 }
  0x11   : > { %p1088_p13 = pnand %p752_p9, %p119_p10  ;;  %s999_s27 = smov [#allocation5]  }
  0x12   : > { %s1330_s24 = scalar_select %p1080_p11, 1, 0 }
  0x13   : > { %s1331_s25 = scalar_select %p1084_p12, 1, 0 }
  0x14   : > { %s1332_s26 = scalar_select %p1088_p13, 1, 0 }
  0x15   : > { %p785_p2 = pneg %p1088_p13  ;;  %s132_s28 = sshll.u32 %s999_s27, 4  ;;  %s133_s28 = int_to_ptr.vmem [resolvable:$true] %s132_s28 }
  0x16   : > { %p802_p4 = scmp.lt.s32.totalorder %s997_s15, 2  ;;  %p1333_p0 = scmp.eq.s32.totalorder %s1049_s16, 0 }
  0x17   : > { %s1000_s4 = smov [#allocation7]   ;;  %s860_s6 = scalar_lea.vmem %s133_s28, 32 }
  0x18   : > { %p1098_p7 = pnand %p785_p2, %p1333_p0  ;;  %p1104_p3 = pnand %p802_p4, %p1067_p5 }
  0x19   : > { %s142_s5 = sshll.u32 %s1000_s4, 4  ;;  %p861_p9 = scmp.ne.s32.totalorder %s133_s28, %s860_s6  ;;  %s143_s5 = int_to_ptr.vmem [resolvable:$true] %s142_s5 }
  0x1a   : > { %p851_p8 = pneg %p1098_p7  ;;  %p868_p0 = scmp.lt.s32.totalorder %s133_s28, %s133_s28 }
  0x1b   : > { %p869_p1 = scmp.lt.s32.totalorder %s860_s6, %s860_s6 }
  0x1c   : > { %p863_p10 = pnand %p861_p9, %p851_p8 }
  0x1d   : > { %p870_p12 = por %p869_p1, %p868_p0 }
  0x1e   : > { %p864_p2 = pneg %p863_p10 }
  0x20   : > { %p871_p11 = pnand %p870_p12, %p864_p2 }
  0x22   : > { %874 = shalt.err (!%p871_p11)
}
  0x23   : > { %788 = dma.hbm_to_vmem [thread:$0]  (!%p1098_p7), %s1321_s1, 32, %s133_s28, [#allocation6]  }
  0x24   : > { %s156_s9 = sand.u32 1, %s993_s14   ;;  %s886_s10 = scalar_lea.vmem %s143_s5, 2048 }
  0x25   : > { %p887_p4 = scmp.ne.s32.totalorder %s143_s5, %s886_s10  ;;  %p894_p10 = scmp.lt.s32.totalorder %s143_s5, %s143_s5 }
  0x26   : > { %p895_p6 = scmp.lt.s32.totalorder %s886_s10, %s886_s10 }
  0x27   : > { %p889_p5 = pnand %p887_p4, %p851_p8 }
  0x28   : > { %p896_p1 = por %p895_p6, %p894_p10 }
  0x29   : > { %p890_p9 = pneg %p889_p5 }
  0x2b   : > { %p897_p12 = pnand %p896_p1, %p890_p9 }
  0x2d   : > { %900 = shalt.err (!%p897_p12)
}
  0x2e   : > { %s1001_s11 = smov 512   ;;  %s1002_s17 = smov 32  }
  0x2f   : > { %791 = dma.hbm_to_vmem [thread:$0]  (!%p1098_p7), %s1322_s2, 2048, %s143_s5, [#allocation6], %s1001_s11, %s1001_s11, %s1002_s17  }
  0x30   : > { %s756_s22 = sshll.u32 %s156_s9, 6  ;;  %s771_s27 = sshll.u32 %s997_s15, 10 }
  0x31   : > { %s1134_s6 = scalar_lea.hbm %s1320_s0, %s771_s27  ;;  %s160_s7 = scalar_lea.vmem [#allocation2], %s756_s22 }
  0x32   : > { %s167_s8 = sshll.u32 %s160_s7, 4  ;;  %s1138_s29 = scalar_lea.sflag [#allocation3], %s156_s9  ;;  %s1136_s8 = int_to_ptr.vmem [resolvable:$true] %s167_s8 }
  0x33   : > { %s901_s10 = scalar_lea.hbm %s1134_s6, 1024  ;;  %p903_p11 = pneg %p1104_p3 }
  0x34   : > { %p902_p6 = scmp.ne.s32.totalorder %s1134_s6, %s901_s10  ;;  %s906_s20 = scalar_lea.hbm %s1320_s0, 2048 }
  0x35   : > { %p907_p2 = scmp.lt.s32.totalorder %s1134_s6, %s1320_s0  ;;  %p908_p0 = scmp.lt.s32.totalorder %s906_s20, %s901_s10 }
  0x36   : > { %p904_p7 = pnand %p903_p11, %p902_p6 }
  0x37   : > { %p909_p4 = por %p908_p0, %p907_p2 }
  0x38   : > { %p905_p8 = pneg %p904_p7 }
  0x3a   : > { %p910_p5 = pnand %p909_p4, %p905_p8 }
  0x3c   : > { %913 = shalt.err (!%p910_p5)
}
  0x3d   : > { %s914_s9 = scalar_lea.vmem %s1136_s8, 1024  ;;  %s1003_s22 = smov [#allocation2]  }
  0x3e   : > { %p915_p9 = scmp.ne.s32.totalorder %s1136_s8, %s914_s9  ;;  %s919_s4 = sshll.u32 %s1003_s22, 4  ;;  %s920_s4 = int_to_ptr.vmem [resolvable:$false] %s919_s4 }
  0x3f   : > { %s921_s7 = scalar_lea.vmem %s920_s4, 2048  ;;  %p922_p12 = scmp.lt.s32.totalorder %s1136_s8, %s920_s4 }
  0x40   : > { %p917_p10 = pnand %p915_p9, %p903_p11  ;;  %p923_p6 = scmp.lt.s32.totalorder %s921_s7, %s914_s9 }
  0x42   : > { %p918_p1 = pneg %p917_p10  ;;  %p924_p7 = por %p923_p6, %p922_p12 }
  0x44   : > { %p925_p13 = pnand %p924_p7, %p918_p1 }
  0x46   : > { %928 = shalt.err (!%p925_p13)
}
  0x47   : > { %795 = dma.hbm_to_vmem [thread:$0]  (!%p1104_p3), %s1134_s6, 1024, %s1136_s8, %s1138_s29, %s1001_s11, %s1001_s11, %s1002_s17  }
  0x48   : > { %p1336_p11 = scmp.ne.s32.totalorder %s1332_s26, 0 }
  0x49   : > { %s1165_s10 = sand.u32 (!%p1336_p11), 1, %s989_s13   ;;  %p1337_p13 = scmp.ne.s32.totalorder (!%p1336_p11), %s1329_s23, 0 }
  0x4a   : > { %179 = sbr.rel (%p1336_p11) target bundleno = 703 (0x2bf), region = 32  ;;  %s760_s5 = sshll.u32 (!%p1336_p11), %s1165_s10, 6 }
  0x4b   : > { %s182_s19 = scalar_lea.sflag (!%p1336_p11), [#allocation3], %s1165_s10  ;;  %s1171_s30 = scalar_lea.vmem (!%p1336_p11), [#allocation2], %s760_s5 }
  0x4f   : > { %972 = dma.done.wait (%p1337_p13), %s182_s19, 1024  }
  0x50   : > { %974 = vsyncadd (%p1337_p13), %s182_s19, 4294966272  ;;  %p1338_p3 = scmp.eq.s32.totalorder %s1049_s16, 0 }
  0x52   : > { %976 = dma.done.wait (%p1338_p3), [#allocation6], 2080   ;;  %p1339_p8 = pmov %p1338_p3 }
  0x53   : > { %v273_v0 = vld [vmem:[#allocation7 + $0x68] sm:$0xff]  ;;  %v275_v1 = vld [vmem:[#allocation7 + $0x78] sm:$0xff]  ;;  %v1181_v2 = vld [vmem:[#allocation7 + $0x60] sm:$0xff]  ;;  %vm423_vm1 = vcmask 253952   ;;  %vm443_vm4 = vcmask 261120   ;;  %s772_s23 = sshll.u32 %s1049_s16, 10 }
  0x54   : > { %978 = vsyncadd (%p1339_p8), [#allocation6], 4294965216  ;;  %300 = vmatprep.subr.mxu0 %v273_v0  ;;  %370 = vmatprep.subr.mxu1 %v275_v1  ;;  %v1183_v3 = vld [vmem:[#allocation7 + $0x70] sm:$0xff]  ;;  %v1185_v4 = vld [vmem:[#allocation7 + $0x48] sm:$0xff]  ;;  %s215_s26 = scalar_lea.vmem [#allocation8], %s760_s5  ;;  %s1275_s6 = scalar_lea.hbm %s1323_s3, %s772_s23 }
  0x55   : > { %v1187_v5 = vld [vmem:[#allocation7 + $0x58] sm:$0xff]  ;;  %301 = vmatpush1.xpose.msra.mxu0 %v1181_v2  ;;  %371 = vmatpush1.xpose.msra.mxu1 %v1183_v3  ;;  %v1193_v6 = vld [vmem:[#allocation7 + $0x40] sm:$0xff]  ;;  %v1195_v7 = vld [vmem:[#allocation7 + $0x50] sm:$0xff]  ;;  %s659_s11 = sshll.u32 %s215_s26, 4  ;;  %s646_s8 = scalar_lea.sflag [#allocation4], %s1165_s10  ;;  %s1277_s11 = int_to_ptr.vmem [resolvable:$true] %s659_s11 }
  0x56   : > { %302 = vmatprep.subr.mxu0 %v1185_v4  ;;  %372 = vmatprep.subr.mxu1 %v1187_v5  ;;  %v1197_v8 = vld [vmem:[#allocation7 + $0x28] sm:$0xff]  ;;  %v1199_v9 = vld [vmem:[#allocation7 + $0x38] sm:$0xff]  ;;  %v1201_v10 = vld [vmem:[#allocation7 + $0x20] sm:$0xff]  ;;  %s929_s29 = scalar_lea.vmem %s1277_s11, 1024  ;;  %p1340_p0 = scmp.ne.s32.totalorder %s1330_s24, 0 }
  0x57   : > { %v1203_v11 = vld [vmem:[#allocation7 + $0x30] sm:$0xff]  ;;  %v1206_v12 = vld [vmem:[%s1171_s30 + $0x8] sm:$0xff]  ;;  %v1224_v18 = vld [vmem:[%s1171_s30] sm:$0xff]  ;;  %p930_p2 = scmp.ne.s32.totalorder %s1277_s11, %s929_s29  ;;  %s1005_s20 = smov [#allocation8]  }
  0x58   : > { %v1209_v13 = vld [vmem:[%s1171_s30 + $0x28] sm:$0xff]  ;;  %v225_v14 = vmul.f32 %v1206_v12, %v1206_v12  ;;  %v1218_v16 = vld [vmem:[%s1171_s30 + $0x18] sm:$0xff]  ;;  %v1233_v21 = vld [vmem:[%s1171_s30 + $0x20] sm:$0xff]  ;;  %v224_v22 = vmul.f32 %v1224_v18, %v1224_v18  ;;  %s933_s27 = sshll.u32 %s1005_s20, 4  ;;  %s934_s27 = int_to_ptr.vmem [resolvable:$false] %s933_s27 }
  0x59   : > { %303 = vmatpush1.xpose.msra.mxu0 %v1193_v6  ;;  %373 = vmatpush1.xpose.msra.mxu1 %v1195_v7  ;;  %v229_v15 = vmul.f32 %v1209_v13, %v1209_v13  ;;  %v1221_v17 = vld [vmem:[%s1171_s30 + $0x38] sm:$0xff]  ;;  %v227_v19 = vmul.f32 %v1218_v16, %v1218_v16  ;;  %v1238_v23 = vld [vmem:[%s1171_s30 + $0x10] sm:$0xff]  ;;  %v228_v28 = vmul.f32 %v1233_v21, %v1233_v21  ;;  %v260_v35 = vld [vmem:[#allocation7] sm:$0xff]  ;;  %p931_p4 = pnand %p930_p2, %p1340_p0  ;;  %s935_s28 = scalar_lea.vmem %s934_s27, 2048 }
  0x5a   : > { %304 = vmatprep.subr.mxu0 %v1197_v8  ;;  %374 = vmatprep.subr.mxu1 %v1199_v9  ;;  %v231_v20 = vmul.f32 %v1221_v17, %v1221_v17  ;;  %v1241_v24 = vld [vmem:[%s1171_s30 + $0x30] sm:$0xff]  ;;  %v263_v26 = vld [vmem:[#allocation7 + $0x18] sm:$0xff]  ;;  %v226_v29 = vmul.f32 %v1238_v23, %v1238_v23  ;;  %p936_p9 = scmp.lt.s32.totalorder %s1277_s11, %s934_s27  ;;  %p937_p10 = scmp.lt.s32.totalorder %s935_s28, %s929_s29 }
  0x5b   : > { %v261_v25 = vld [vmem:[#allocation7 + $0x8] sm:$0xff]  ;;  %v239_v27 = vadd.f32 %v229_v15, %v225_v14  ;;  %v230_v30 = vmul.f32 %v1241_v24, %v1241_v24  ;;  %v232_v33 = vadd.f32 %v228_v28, %v224_v22  ;;  %v262_v36 = vld [vmem:[#allocation7 + $0x10] sm:$0xff]  ;;  %v432_v22 = vld [vmem:[#allocation5] sm:$0x3]  ;;  %p932_p5 = pneg %p931_p4 }
  0x5c   : > { %v253_v31 = vadd.f32 %v231_v20, %v227_v19  ;;  %p938_p1 = por %p937_p10, %p936_p9 }
  0x5d   : > { %305 = vmatpush1.xpose.msra.mxu0 %v1201_v10  ;;  %375 = vmatpush1.xpose.msra.mxu1 %v1203_v11  ;;  %v240_v32 = vrot.slane %v239_v27, 4  ;;  %v246_v34 = vadd.f32 %v230_v30, %v226_v29  ;;  %v233_v39 = vrot.slane %v232_v33, 4 }
  0x5e   : > { %306 = vmatprep.subr.mxu0 %v261_v25  ;;  %376 = vmatprep.subr.mxu1 %v263_v26  ;;  %v254_v37 = vrot.slane %v253_v31, 4  ;;  %p939_p12 = pnand %p938_p1, %p932_p5 }
  0x5f   : > { %v241_v38 = vadd.f32 %v240_v32, %v239_v27  ;;  %v247_v40 = vrot.slane %v246_v34, 4  ;;  %v234_v43 = vadd.f32 %v233_v39, %v232_v33 }
  0x60   : > { %v255_v41 = vadd.f32 %v254_v37, %v253_v31 }
  0x61   : > { %307 = vmatpush1.xpose.msra.mxu0 %v260_v35  ;;  %377 = vmatpush1.xpose.msra.mxu1 %v262_v36  ;;  %v242_v42 = vrot.slane %v241_v38, 2  ;;  %v248_v44 = vadd.f32 %v247_v40, %v246_v34  ;;  %v235_v47 = vrot.slane %v234_v43, 2 }
  0x62   : > { %v256_v45 = vrot.slane %v255_v41, 2  ;;  %471 = vmatprep.subr.mxu0 %v273_v0  ;;  %542 = vmatprep.subr.mxu1 %v275_v1 }
  0x63   : > { %v243_v46 = vadd.f32 %v242_v42, %v241_v38  ;;  %v249_v48 = vrot.slane %v248_v44, 2  ;;  %v236_v51 = vadd.f32 %v235_v47, %v234_v43 }
  0x64   : > { %v257_v49 = vadd.f32 %v256_v45, %v255_v41 }
  0x65   : > { %v244_v50 = vrot.slane %v243_v46, 1  ;;  %v250_v52 = vadd.f32 %v249_v48, %v248_v44  ;;  %v237_v55 = vrot.slane %v236_v51, 1 }
  0x66   : > { %v258_v53 = vrot.slane %v257_v49, 1 }
  0x67   : > { %v245_v54 = vadd.f32 %v244_v50, %v243_v46  ;;  %v251_v56 = vrot.slane %v250_v52, 1  ;;  %v238_v58 = vadd.f32 %v237_v55, %v236_v51 }
  0x68   : > { %v259_v57 = vadd.f32 %v258_v53, %v257_v49 }
  0x69   : > { %340 = vmatprep.mubr.f32.mxu0 %v245_v54  ;;  %v252_v59 = vadd.f32 %v251_v56, %v250_v52 }
  0x6a   : > { %410 = vmatprep.mubr.f32.mxu1 %v259_v57  ;;  %341 = vmatmul.mubr.f32.vlgmr.msra.gmra.mxu0 %v238_v58 }
  0x6b   : > { %411 = vmatmul.mubr.f32.vlgmr.msra.gmra.mxu1 %v252_v59  ;;  %472 = vmatpush1.msra.mxu0 %v1181_v2 }
  0x6c   : > { %543 = vmatpush1.msra.mxu1 %v1183_v3  ;;  %473 = vmatprep.subr.mxu0 %v1185_v4 }
  0x6d   : > { %544 = vmatprep.subr.mxu1 %v1187_v5  ;;  %474 = vmatpush1.msra.mxu0 %v1193_v6 }
  0x6e   : > { %545 = vmatpush1.msra.mxu1 %v1195_v7  ;;  %475 = vmatprep.subr.mxu0 %v1197_v8  ;;  %v1004_v7 = vmov 0.0  }
  0x6f   : > { %546 = vmatprep.subr.mxu1 %v1199_v9  ;;  %476 = vmatpush1.msra.mxu0 %v1201_v10 }
  0x70   : > { %547 = vmatpush1.msra.mxu1 %v1203_v11  ;;  %477 = vmatprep.subr.mxu0 %v261_v25  ;;  %v433_v11 = vlaneseq }
  0x71   : > { %548 = vmatprep.subr.mxu1 %v263_v26  ;;  %478 = vmatpush1.msra.mxu0 %v260_v35 }
  0x72   : > { %549 = vmatpush1.msra.mxu1 %v262_v36  ;;  %511 = vmatprep.mubr.f32.mxu0 %v1004_v7  ;;  %v434_v14 = vshrl.u32 %v433_v11, 7 }
  0x73   : > { %582 = vmatprep.mubr.f32.mxu1 %v1004_v7 }
  0x74   : > { %v438_v15 = vsub.s32 0, %v434_v14  ;;  %vm435_vm3 = vcmp.eq.s32.totalorder %v434_v14, 0  ;;  %v615_v29 = vsub.s32 1, %v434_v14 }
 0x12a   : > { %v342_v60 = vpop.f32.mrf.mxu0 }
 0x12b   : > { %v412_v61 = vpop.f32.mrf.mxu1 }
 0x12c   : > { %v413_v62 = vadd.f32 %v412_v61, %v342_v60  ;;  %v344_v63 = vpop.f32.mrf.mxu0 }
 0x12d   : > { %v414_v0 = vpop.f32.mrf.mxu1 }
 0x12e   : > { %845 = vrsqrt.f32 %v413_v62  ;;  %vm418_vm0 = vcmp.eq.f32.partialorder %v413_v62, inf  ;;  %v421_v3 = vand.u32 2147483648, %v413_v62  ;;  %vm420_vm2 = vcmp.eq.f32.partialorder %v413_v62, 0.0 }
 0x13b   : > { %v846_v1 = vpop.eup %845 }
 0x13c   : > { %v417_v2 = vmul.f32 %v846_v1, %v413_v62 }
 0x13e   : > { %v419_v4 = vsel %vm418_vm0, %v413_v62, %v417_v2 }
 0x13f   : > { %v422_v5 = vsel %vm420_vm2, %v421_v3, %v419_v4 }
 0x140   : > { %v424_v6 = vsel %vm423_vm1, %v422_v5, 0.0 }
 0x141   : > { %425 = vadd.xlane.f32.xlu0 %v424_v6 }
 0x1ca   : > { %v426_v8 = vpop.xlane.xlu0 %425 }
 0x1cb   : > { %v428_v9 = vmul.f32 0.03125, %v426_v8 }
 0x1cd   : > { %v429_v10 = vadd.f32 1e-06, %v428_v9 }
 0x1cf   : > { %847 = vrcp.f32 %v429_v10 }
 0x1dc   : > { %v848_v19 = vpop.eup %847 }
 0x1dd   : > { %v431_v20 = vmul.f32 %v848_v19, %v422_v5 }
 0x1df   : > { %v439_v25 = vrot.slane %v431_v20, %v438_v15 }
 0x1e1   : > { %v440_v26 = vmul.f32 %v439_v25, %v432_v22 }
 0x1e3   : > { %v441_v27 = vadd.f32 1.0, %v440_v26 }
 0x1e5   : > { %v442_v28 = vsel %vm435_vm3, %v441_v27, %v432_v22 }
 0x1e6   : > { %764 = vmatmul.mubr.msk.f32.vlgmr.msra.gmra.mxu0 %vm443_vm4, %v442_v28  ;;  %765 = vmatmul.mubr.msk.f32.vlgmr.msra.gmra.mxu1 %vm443_vm4, %v442_v28 }
 0x2a6   : > { %v513_v30 = vpop.f32.mrf.mxu0  ;;  %v584_v31 = vpop.f32.mrf.mxu1 }
 0x2a7   : > { %v592_v32 = vrot.slane %v513_v30, %v438_v15  ;;  %v600_v33 = vrot.slane %v584_v31, %v438_v15  ;;  %v616_v34 = vrot.slane %v513_v30, %v615_v29  ;;  %v624_v35 = vrot.slane %v584_v31, %v615_v29 }
 0x2a8   : > { %v515_v36 = vpop.f32.mrf.mxu0  ;;  %v586_v37 = vpop.f32.mrf.mxu1 }
 0x2a9   : > { %v605_v38 = vmul.f32 %v592_v32, %v1224_v18  ;;  %v609_v39 = vmul.f32 %v592_v32, %v1233_v21  ;;  %v607_v40 = vmul.f32 %v600_v33, %v1238_v23  ;;  %v611_v41 = vmul.f32 %v600_v33, %v1241_v24 }
 0x2aa   : > { %v596_v42 = vrot.slane %v515_v36, %v438_v15  ;;  %v620_v43 = vrot.slane %v515_v36, %v615_v29  ;;  %v604_v44 = vrot.slane %v586_v37, %v438_v15  ;;  %v628_v45 = vrot.slane %v586_v37, %v615_v29 }
 0x2ab   : > { %v629_v46 = vadd.f32 %v616_v34, %v605_v38  ;;  %v633_v47 = vadd.f32 %v616_v34, %v609_v39  ;;  %v631_v48 = vadd.f32 %v624_v35, %v607_v40  ;;  %v635_v49 = vadd.f32 %v624_v35, %v611_v41 }
 0x2ac   : > { %v606_v18 = vmul.f32 %v596_v42, %v1206_v12  ;;  %v610_v21 = vmul.f32 %v596_v42, %v1209_v13  ;;  %v608_v23 = vmul.f32 %v604_v44, %v1218_v16  ;;  %v612_v24 = vmul.f32 %v604_v44, %v1221_v17 }
 0x2ad   : > { %637 = vst [vmem:[%s215_s26] sm:$0xff] %v629_v46  ;;  %641 = vst [vmem:[%s215_s26 + $0x20] sm:$0xff] %v633_v47 }
 0x2ae   : > { %639 = vst [vmem:[%s215_s26 + $0x10] sm:$0xff] %v631_v48  ;;  %643 = vst [vmem:[%s215_s26 + $0x30] sm:$0xff] %v635_v49  ;;  %v630_v12 = vadd.f32 %v620_v43, %v606_v18  ;;  %v634_v13 = vadd.f32 %v620_v43, %v610_v21  ;;  %v632_v16 = vadd.f32 %v628_v45, %v608_v23 }
 0x2af   : > { %v636_v50 = vadd.f32 %v628_v45, %v612_v24 }
 0x2b0   : > { %638 = vst [vmem:[%s215_s26 + $0x8] sm:$0xff] %v630_v12  ;;  %642 = vst [vmem:[%s215_s26 + $0x28] sm:$0xff] %v634_v13 }
 0x2b1   : > { %640 = vst [vmem:[%s215_s26 + $0x18] sm:$0xff] %v632_v16  ;;  %644 = vst [vmem:[%s215_s26 + $0x38] sm:$0xff] %v636_v50 }
 0x2b2   : > { %942 = shalt.err (!%p939_p12)
}
 0x2b3   : > { %s943_s9 = scalar_lea.hbm %s1275_s6, 1024  ;;  %s947_s7 = scalar_lea.hbm %s1323_s3, 2048 }
 0x2b4   : > { %p944_p6 = scmp.ne.s32.totalorder %s1275_s6, %s943_s9  ;;  %p948_p13 = scmp.lt.s32.totalorder %s1275_s6, %s1323_s3 }
 0x2b5   : > { %p949_p3 = scmp.lt.s32.totalorder %s947_s7, %s943_s9 }
 0x2b6   : > { %p945_p7 = pnand %p944_p6, %p1340_p0 }
 0x2b7   : > { %p950_p8 = por %p949_p3, %p948_p13 }
 0x2b8   : > { %p946_p11 = pneg %p945_p7 }
 0x2ba   : > { %p951_p2 = pnand %p950_p8, %p946_p11 }
 0x2bc   : > { %954 = shalt.err (!%p951_p2)
}
 0x2bd   : > { %s1006_s30 = smov 512   ;;  %s1007_s23 = smov 32  }
 0x2be   : > { %783 = dma.vmem_to_hbm [thread:$0]  (%p1340_p0), %s1277_s11, 1024, %s1275_s6, %s646_s8, %s1006_s30, %s1006_s30, %s1007_s23  }
 0x2bf PF: > { %s674_s26 = sand.u32 1, %s985_s12   ;;  %p1341_p4 = scmp.ne.s32.totalorder %s1331_s25, 0 }
 0x2c0   : > { %p1342_p5 = scmp.ge.s32.totalorder %s997_s15, 2  ;;  %s675_s16 = scalar_lea.sflag [#allocation4], %s674_s26 }
 0x2c2   : > { %p797_p9 = pnand %p1342_p5, %p1341_p4 }
 0x2c4   : > { %p798_p10 = pneg %p797_p9 }
 0x2c6   : > { %980 = dma.done.wait (%p798_p10), %s675_s16, 1024  }
 0x2c7   : > { %982 = vsyncadd (%p798_p10), %s675_s16, 4294966272  ;;  %p17_p1 = scmp.ge.s32.totalorder %s1053_s18, 4   ;;  %s1343_s12 = smov %s989_s13 }
 0x2c8   : > { %s1344_s13 = smov %s993_s14  ;;  %s1345_s14 = smov %s1065_s21 }
 0x2c9   : > { %s1346_s15 = smov %s1053_s18  ;;  %19 = sbr.rel (!%p17_p1) target bundleno = 6 (0x6), region = 85 }
 0x2ce   :  { %680 = vsyncpa [#allocation3], 1 }
 0x2cf   :  { %682 = vsyncpa [#allocation3 + $0x1], 1 }
 0x2d0   :  { %683 = vsyncpa [#allocation6], 1 }
 0x2d1   :  { %684 = vsyncpa [#allocation4], 1 }
 0x2d2   :  { %686 = vsyncpa [#allocation4 + $0x1], 1 }

</bundles_post_ra>
